<compile_context>
chip_gen: v6e
topology: v6e:2x2x1
jax: 0.10.0
libtpu: 0.0.40
codegen_flags: <defaults>
</compile_context>

<pallas_src>
import math
import functools

import jax
import jax.numpy as jnp
import numpy as np
from jax.experimental import pallas as pl
from jax.experimental.pallas import tpu as pltpu


def _mha_kernel(q_ref, k_ref, v_ref,
                wq_ref, wk_ref, wv_ref,
                bq_ref, bk_ref, bv_ref,
                wfc_ref, bfc_ref,
                gamma_ref, beta_ref,
                out_ref, attn_ref, logattn_ref,
                heads_ref,
                *, n_head, d_k, d_v, b_tile, len_q, len_k, compute_dtype):
    # Per-grid-step shapes:
    #   q_ref            : (b_tile*len_q, d_model)   (also the residual)
    #   k_ref, v_ref     : (b_tile*len_k, d_model)
    #   wq_ref/wk_ref    : (d_model, n_head*d_k)      pre-transposed, heads on lanes
    #   wv_ref           : (d_model, n_head*d_v)
    #   bq/bk            : (1, n_head*d_k), bv: (1, n_head*d_v)
    #   wfc_ref          : (n_head*d_v, d_model)      fc weight^T (head-major rows)
    #   bfc/gamma/beta   : (1, d_model)
    #   out_ref          : (b_tile*len_q, d_model)
    #   attn_ref/logattn : (b_tile, len_q, n_head*len_k)   lane-packed heads
    #   heads_ref        : VMEM scratch (b_tile*len_q, n_head*d_v), compute_dtype
    inv_temp = 1.0 / math.sqrt(float(d_k))
    row_q = b_tile * len_q

    qc = q_ref[...].astype(compute_dtype)
    kc = k_ref[...].astype(compute_dtype)
    vc = v_ref[...].astype(compute_dtype)

    # Fused projections: one wide MXU matmul each (heads on the lane axis), f32 acc.
    Q = jnp.dot(qc, wq_ref[...], preferred_element_type=jnp.float32) + bq_ref[...]
    K = jnp.dot(kc, wk_ref[...], preferred_element_type=jnp.float32) + bk_ref[...]
    V = jnp.dot(vc, wv_ref[...], preferred_element_type=jnp.float32) + bv_ref[...]

    # Tiny static loop over heads; the batch-tile is handled by batched einsums.
    for h in range(n_head):
        qh = Q[:, h * d_k:(h + 1) * d_k].reshape(b_tile, len_q, d_k).astype(compute_dtype)
        kh = K[:, h * d_k:(h + 1) * d_k].reshape(b_tile, len_k, d_k).astype(compute_dtype)
        vh = V[:, h * d_v:(h + 1) * d_v].reshape(b_tile, len_k, d_v).astype(compute_dtype)

        # Batched over b_tile; contraction on d_k; f32 accumulation.
        scores = jnp.einsum("bqd,bkd->bqk", qh, kh,
                            preferred_element_type=jnp.float32) * inv_temp

        # Softmax / log-softmax over the key axis, all in f32.
        m = jnp.max(scores, axis=-1, keepdims=True)
        ex = jnp.exp(scores - m)
        s = jnp.sum(ex, axis=-1, keepdims=True)
        attn_h = ex / s
        logattn_h = scores - m - jnp.log(s)

        # Direct stores into the output refs (no stack/concatenate, bounded live ranges).
        attn_ref[:, :, h * len_k:(h + 1) * len_k] = attn_h
        logattn_ref[:, :, h * len_k:(h + 1) * len_k] = logattn_h

        # attn @ V, batched over b_tile; pack the head output into the fc-input slab.
        o_h = jnp.einsum("bqk,bkd->bqd", attn_h.astype(compute_dtype), vh,
                         preferred_element_type=jnp.float32)
        heads_ref[:, h * d_v:(h + 1) * d_v] = (
            o_h.reshape(row_q, d_v).astype(heads_ref.dtype))

    # Single fc matmul (contraction depth n_head*d_v), then bias + residual +
    # LayerNorm once over the whole (row_q, d_model) slab.
    residual = q_ref[...]
    x = (jnp.dot(heads_ref[...], wfc_ref[...], preferred_element_type=jnp.float32)
         + bfc_ref[...] + residual)
    mean = jnp.mean(x, axis=-1, keepdims=True)
    var = jnp.mean((x - mean) ** 2, axis=-1, keepdims=True)
    out_ref[...] = (x - mean) * jax.lax.rsqrt(var + 1e-5) * gamma_ref[...] + beta_ref[...]


def multi_head_attention(q, k, v, params, *, n_head, d_k, d_v,
                         b_tile=None, use_bf16=True):
    sz_b, len_q, d_model = q.shape
    _, len_k, _ = k.shape

    if b_tile is None:
        # >=2 grid steps when possible: shards the batch axis across v7x's two
        # TensorCores and lets BlockSpec double-buffering hide the input DMA.
        b_tile = sz_b // 2 if (sz_b >= 2 and sz_b % 2 == 0) else sz_b
    assert sz_b % b_tile == 0
    n_steps = sz_b // b_tile

    compute_dtype = jnp.bfloat16 if use_bf16 else jnp.float32
    wdt = compute_dtype

    # Fold batch into the matmul M dimension (lane-dense 2-D slabs).
    q2 = q.reshape(sz_b * len_q, d_model)
    k2 = k.reshape(sz_b * len_k, d_model)
    v2 = v.reshape(sz_b * len_k, d_model)

    # Host-side weight layout: pre-transposed, heads fused on the lane axis.
    wq_t = params["w_qs"].T.astype(wdt)                   # (d_model, n_head*d_k)
    wk_t = params["w_ks"].T.astype(wdt)
    wv_t = params["w_vs"].T.astype(wdt)                   # (d_model, n_head*d_v)
    bq = params["b_qs"].reshape(1, n_head * d_k)
    bk = params["b_ks"].reshape(1, n_head * d_k)
    bv = params["b_vs"].reshape(1, n_head * d_v)
    wfc = params["w_fc"].T.astype(wdt)                    # (n_head*d_v, d_model)
    bfc = params["b_fc"].reshape(1, d_model)
    gamma = params["ln_gamma"].reshape(1, d_model)
    beta = params["ln_beta"].reshape(1, d_model)

    kernel = functools.partial(_mha_kernel, n_head=n_head, d_k=d_k, d_v=d_v,
                               b_tile=b_tile, len_q=len_q, len_k=len_k,
                               compute_dtype=compute_dtype)

    row_q = b_tile * len_q
    row_k = b_tile * len_k
    full2 = lambda i: (0, 0)

    out2, attn_p, logattn_p = pl.pallas_call(
        kernel,
        out_shape=(
            jax.ShapeDtypeStruct((sz_b * len_q, d_model), jnp.float32),
            jax.ShapeDtypeStruct((sz_b, len_q, n_head * len_k), jnp.float32),
            jax.ShapeDtypeStruct((sz_b, len_q, n_head * len_k), jnp.float32),
        ),
        grid=(n_steps,),
        in_specs=[
            pl.BlockSpec((row_q, d_model), lambda i: (i, 0)),            # q (rows)
            pl.BlockSpec((row_k, d_model), lambda i: (i, 0)),            # k
            pl.BlockSpec((row_k, d_model), lambda i: (i, 0)),            # v
            pl.BlockSpec((d_model, n_head * d_k), full2),                # wq^T fused
            pl.BlockSpec((d_model, n_head * d_k), full2),                # wk^T fused
            pl.BlockSpec((d_model, n_head * d_v), full2),                # wv^T fused
            pl.BlockSpec((1, n_head * d_k), full2),                      # bq
            pl.BlockSpec((1, n_head * d_k), full2),                      # bk
            pl.BlockSpec((1, n_head * d_v), full2),                      # bv
            pl.BlockSpec((n_head * d_v, d_model), full2),                # wfc^T
            pl.BlockSpec((1, d_model), full2),                           # bfc
            pl.BlockSpec((1, d_model), full2),                           # gamma
            pl.BlockSpec((1, d_model), full2),                           # beta
        ],
        out_specs=[
            pl.BlockSpec((row_q, d_model), lambda i: (i, 0)),
            pl.BlockSpec((b_tile, len_q, n_head * len_k), lambda i: (i, 0, 0)),
            pl.BlockSpec((b_tile, len_q, n_head * len_k), lambda i: (i, 0, 0)),
        ],
        scratch_shapes=[pltpu.VMEM((row_q, n_head * d_v), compute_dtype)],
        compiler_params=pltpu.CompilerParams(
            dimension_semantics=("parallel",),
            # Explicit cap: safe on v7x (64 MiB physical VMEM), above the 32 MiB
            # scoped default on v5e/v6e.  b_tile must be chosen to fit under it.
            vmem_limit_bytes=48 * 1024 * 1024),
    )(q2, k2, v2, wq_t, wk_t, wv_t, bq, bk, bv, wfc, bfc, gamma, beta)

    out = out2.reshape(sz_b, len_q, d_model)
    # Unpack lane-packed heads back to the reference head-major layout:
    # (b, q, h*len_k) -> (h, b, q, len_k) -> (n_head*sz_b, len_q, len_k)
    attn = (attn_p.reshape(sz_b, len_q, n_head, len_k)
            .transpose(2, 0, 1, 3).reshape(n_head * sz_b, len_q, len_k))
    log_attn = (logattn_p.reshape(sz_b, len_q, n_head, len_k)
                .transpose(2, 0, 1, 3).reshape(n_head * sz_b, len_q, len_k))
    return out, attn, log_attn


def _reference(q, k, v, params, *, n_head, d_k, d_v):
    """Pure-JAX reference mirroring the PyTorch forward (dropout = identity)."""
    sz_b, len_q, d_model = q.shape
    _, len_k, _ = k.shape
    residual = q
    qp = (q @ params["w_qs"].T + params["b_qs"]).reshape(sz_b, len_q, n_head, d_k)
    kp = (k @ params["w_ks"].T + params["b_ks"]).reshape(sz_b, len_k, n_head, d_k)
    vp = (v @ params["w_vs"].T + params["b_vs"]).reshape(sz_b, len_k, n_head, d_v)
    qp = jnp.transpose(qp, (2, 0, 1, 3)).reshape(-1, len_q, d_k)
    kp = jnp.transpose(kp, (2, 0, 1, 3)).reshape(-1, len_k, d_k)
    vp = jnp.transpose(vp, (2, 0, 1, 3)).reshape(-1, len_k, d_v)
    attn = jnp.einsum("bqd,bkd->bqk", qp, kp) / np.sqrt(d_k)
    log_attn = jax.nn.log_softmax(attn, axis=2)
    attn = jax.nn.softmax(attn, axis=2)
    out = jnp.einsum("bqk,bkd->bqd", attn, vp)
    out = out.reshape(n_head, sz_b, len_q, d_v)
    out = jnp.transpose(out, (1, 2, 0, 3)).reshape(sz_b, len_q, -1)
    out = out @ params["w_fc"].T + params["b_fc"]
    x = out + residual
    mean = jnp.mean(x, axis=-1, keepdims=True)
    var = jnp.mean((x - mean) ** 2, axis=-1, keepdims=True)
    x = (x - mean) / jnp.sqrt(var + 1e-5) * params["ln_gamma"] + params["ln_beta"]
    return x, attn, log_attn


if __name__ == "__main__":
    # Small, module-consistent shapes.
    n_head, d_model, d_k, d_v = 2, 32, 16, 16
    sz_b, seq = 2, 8

    key = jax.random.PRNGKey(0)
    ks = jax.random.split(key, 10)

    params = {
        "w_qs": (jax.random.normal(ks[0], (n_head * d_k, d_model), jnp.float32)
                 * np.sqrt(2.0 / (d_model + d_k))),
        "w_ks": (jax.random.normal(ks[1], (n_head * d_k, d_model), jnp.float32)
                 * np.sqrt(2.0 / (d_model + d_k))),
        "w_vs": (jax.random.normal(ks[2], (n_head * d_v, d_model), jnp.float32)
                 * np.sqrt(2.0 / (d_model + d_v))),
        "b_qs": jax.random.normal(ks[3], (n_head * d_k,), jnp.float32) * 0.02,
        "b_ks": jax.random.normal(ks[4], (n_head * d_k,), jnp.float32) * 0.02,
        "b_vs": jax.random.normal(ks[5], (n_head * d_v,), jnp.float32) * 0.02,
        # xavier_normal for fc weight: std = sqrt(2 / (fan_in + fan_out))
        "w_fc": (jax.random.normal(ks[6], (d_model, n_head * d_v), jnp.float32)
                 * np.sqrt(2.0 / (n_head * d_v + d_model))),
        "b_fc": jax.random.normal(ks[7], (d_model,), jnp.float32) * 0.02,
        "ln_gamma": jnp.ones((d_model,), jnp.float32),
        "ln_beta": jnp.zeros((d_model,), jnp.float32),
    }

    q = jax.random.normal(ks[8], (sz_b, seq, d_model), jnp.float32)
    kv_key0, kv_key1 = jax.random.split(ks[9])
    k = jax.random.normal(kv_key0, (sz_b, seq, d_model), jnp.float32)
    v = jax.random.normal(kv_key1, (sz_b, seq, d_model), jnp.float32)

    ref_out, ref_attn, ref_log_attn = _reference(
        q, k, v, params, n_head=n_head, d_k=d_k, d_v=d_v)

    # f32 matmul path: exact parity with the PyTorch/JAX reference.
    out, attn, log_attn = multi_head_attention(
        q, k, v, params, n_head=n_head, d_k=d_k, d_v=d_v, use_bf16=False)
    jax.block_until_ready((out, attn, log_attn))
    np.testing.assert_allclose(np.asarray(out), np.asarray(ref_out), rtol=1e-4, atol=1e-4)
    np.testing.assert_allclose(np.asarray(attn), np.asarray(ref_attn), rtol=1e-4, atol=1e-5)
    np.testing.assert_allclose(np.asarray(log_attn), np.asarray(ref_log_attn), rtol=1e-4, atol=1e-4)

    # bf16 matmul-operand path (MXU-native on v5e/v6e/v7x): looser tolerance.
    out_b, attn_b, log_attn_b = multi_head_attention(
        q, k, v, params, n_head=n_head, d_k=d_k, d_v=d_v, use_bf16=True)
    jax.block_until_ready((out_b, attn_b, log_attn_b))
    np.testing.assert_allclose(np.asarray(out_b), np.asarray(ref_out), rtol=5e-2, atol=5e-2)
    np.testing.assert_allclose(np.asarray(attn_b), np.asarray(ref_attn), rtol=5e-2, atol=5e-2)
    np.testing.assert_allclose(np.asarray(log_attn_b), np.asarray(ref_log_attn), rtol=5e-2, atol=5e-2)

    print("KERNEL_OK")
</pallas_src>

<mosaic_0001>
module attributes {stable_mosaic.version = 11 : i64} {
  func.func @_mha_kernel(%arg0: i32, %arg1: memref<8x32xf32, #tpu.memory_space<vmem>>, %arg2: memref<8x32xf32, #tpu.memory_space<vmem>>, %arg3: memref<8x32xf32, #tpu.memory_space<vmem>>, %arg4: memref<32x32xf32, #tpu.memory_space<vmem>>, %arg5: memref<32x32xf32, #tpu.memory_space<vmem>>, %arg6: memref<32x32xf32, #tpu.memory_space<vmem>>, %arg7: memref<1x32xf32, #tpu.memory_space<vmem>>, %arg8: memref<1x32xf32, #tpu.memory_space<vmem>>, %arg9: memref<1x32xf32, #tpu.memory_space<vmem>>, %arg10: memref<32x32xf32, #tpu.memory_space<vmem>>, %arg11: memref<1x32xf32, #tpu.memory_space<vmem>>, %arg12: memref<1x32xf32, #tpu.memory_space<vmem>>, %arg13: memref<1x32xf32, #tpu.memory_space<vmem>>, %arg14: memref<8x32xf32, #tpu.memory_space<vmem>>, %arg15: memref<1x8x16xf32, #tpu.memory_space<vmem>>, %arg16: memref<1x8x16xf32, #tpu.memory_space<vmem>>, %arg17: memref<8x32xf32, #tpu.memory_space<vmem>>) attributes {dimension_semantics = [#tpu.dimension_semantics<parallel>], iteration_bounds = array<i64: 2>, scalar_prefetch = 0 : i64, scratch_operands = 1 : i64, tpu.core_type = #tpu.core_type<tc>, window_params = [{transform_indices = @transform_0, window_bounds = array<i64: 8, 32>}, {transform_indices = @transform_1, window_bounds = array<i64: 8, 32>}, {transform_indices = @transform_2, window_bounds = array<i64: 8, 32>}, {pipeline_mode = #tpu.pipeline_mode<synchronous>, transform_indices = @transform_3, window_bounds = array<i64: 32, 32>}, {pipeline_mode = #tpu.pipeline_mode<synchronous>, transform_indices = @transform_4, window_bounds = array<i64: 32, 32>}, {pipeline_mode = #tpu.pipeline_mode<synchronous>, transform_indices = @transform_5, window_bounds = array<i64: 32, 32>}, {pipeline_mode = #tpu.pipeline_mode<synchronous>, transform_indices = @transform_6, window_bounds = array<i64: 1, 32>}, {pipeline_mode = #tpu.pipeline_mode<synchronous>, transform_indices = @transform_7, window_bounds = array<i64: 1, 32>}, {pipeline_mode = #tpu.pipeline_mode<synchronous>, transform_indices = @transform_8, window_bounds = array<i64: 1, 32>}, {pipeline_mode = #tpu.pipeline_mode<synchronous>, transform_indices = @transform_9, window_bounds = array<i64: 32, 32>}, {pipeline_mode = #tpu.pipeline_mode<synchronous>, transform_indices = @transform_10, window_bounds = array<i64: 1, 32>}, {pipeline_mode = #tpu.pipeline_mode<synchronous>, transform_indices = @transform_11, window_bounds = array<i64: 1, 32>}, {pipeline_mode = #tpu.pipeline_mode<synchronous>, transform_indices = @transform_12, window_bounds = array<i64: 1, 32>}, {transform_indices = @transform_13, window_bounds = array<i64: 8, 32>}, {transform_indices = @transform_14, window_bounds = array<i64: 1, 8, 16>}, {transform_indices = @transform_15, window_bounds = array<i64: 1, 8, 16>}]} {
    %c0 = arith.constant 0 : index
    %c0_0 = arith.constant 0 : index
    %0 = vector.load %arg1[%c0, %c0_0] : memref<8x32xf32, #tpu.memory_space<vmem>>, vector<8x32xf32>
    %c0_1 = arith.constant 0 : index
    %c0_2 = arith.constant 0 : index
    %1 = vector.load %arg2[%c0_1, %c0_2] : memref<8x32xf32, #tpu.memory_space<vmem>>, vector<8x32xf32>
    %c0_3 = arith.constant 0 : index
    %c0_4 = arith.constant 0 : index
    %2 = vector.load %arg3[%c0_3, %c0_4] : memref<8x32xf32, #tpu.memory_space<vmem>>, vector<8x32xf32>
    %c0_5 = arith.constant 0 : index
    %c0_6 = arith.constant 0 : index
    %3 = vector.load %arg4[%c0_5, %c0_6] : memref<32x32xf32, #tpu.memory_space<vmem>>, vector<32x32xf32>
    %cst = arith.constant dense<0.000000e+00> : vector<8x32xf32>
    %4 = tpu.matmul %0, %3, %cst {dimension_numbers = #tpu.dot_dimension_numbers<[1], [0], [0], [1], [0, 0, 1, 1], [], []>} : vector<8x32xf32>, vector<32x32xf32>, vector<8x32xf32> -> vector<8x32xf32>
    %c0_7 = arith.constant 0 : index
    %c0_8 = arith.constant 0 : index
    %5 = vector.load %arg7[%c0_7, %c0_8] : memref<1x32xf32, #tpu.memory_space<vmem>>, vector<1x32xf32>
    %6 = vector.broadcast %5 : vector<1x32xf32> to vector<8x32xf32>
    %7 = arith.addf %4, %6 : vector<8x32xf32>
    %c0_9 = arith.constant 0 : index
    %c0_10 = arith.constant 0 : index
    %8 = vector.load %arg5[%c0_9, %c0_10] : memref<32x32xf32, #tpu.memory_space<vmem>>, vector<32x32xf32>
    %cst_11 = arith.constant dense<0.000000e+00> : vector<8x32xf32>
    %9 = tpu.matmul %1, %8, %cst_11 {dimension_numbers = #tpu.dot_dimension_numbers<[1], [0], [0], [1], [0, 0, 1, 1], [], []>} : vector<8x32xf32>, vector<32x32xf32>, vector<8x32xf32> -> vector<8x32xf32>
    %c0_12 = arith.constant 0 : index
    %c0_13 = arith.constant 0 : index
    %10 = vector.load %arg8[%c0_12, %c0_13] : memref<1x32xf32, #tpu.memory_space<vmem>>, vector<1x32xf32>
    %11 = vector.broadcast %10 : vector<1x32xf32> to vector<8x32xf32>
    %12 = arith.addf %9, %11 : vector<8x32xf32>
    %c0_14 = arith.constant 0 : index
    %c0_15 = arith.constant 0 : index
    %13 = vector.load %arg6[%c0_14, %c0_15] : memref<32x32xf32, #tpu.memory_space<vmem>>, vector<32x32xf32>
    %cst_16 = arith.constant dense<0.000000e+00> : vector<8x32xf32>
    %14 = tpu.matmul %2, %13, %cst_16 {dimension_numbers = #tpu.dot_dimension_numbers<[1], [0], [0], [1], [0, 0, 1, 1], [], []>} : vector<8x32xf32>, vector<32x32xf32>, vector<8x32xf32> -> vector<8x32xf32>
    %c0_17 = arith.constant 0 : index
    %c0_18 = arith.constant 0 : index
    %15 = vector.load %arg9[%c0_17, %c0_18] : memref<1x32xf32, #tpu.memory_space<vmem>>, vector<1x32xf32>
    %16 = vector.broadcast %15 : vector<1x32xf32> to vector<8x32xf32>
    %17 = arith.addf %14, %16 : vector<8x32xf32>
    %18 = vector.extract_strided_slice %7 {offsets = [0, 0], sizes = [8, 16], strides = [1, 1]} : vector<8x32xf32> to vector<8x16xf32>
    %19 = vector.shape_cast %18 : vector<8x16xf32> to vector<1x8x16xf32>
    %20 = vector.extract_strided_slice %12 {offsets = [0, 0], sizes = [8, 16], strides = [1, 1]} : vector<8x32xf32> to vector<8x16xf32>
    %21 = vector.shape_cast %20 : vector<8x16xf32> to vector<1x8x16xf32>
    %22 = vector.extract_strided_slice %17 {offsets = [0, 0], sizes = [8, 16], strides = [1, 1]} : vector<8x32xf32> to vector<8x16xf32>
    %23 = vector.shape_cast %22 : vector<8x16xf32> to vector<1x8x16xf32>
    "tpu.trace_start"() <{level = 10 : i32, message = "bqd,bkd->bqk"}> : () -> ()
    %cst_19 = arith.constant dense<0.000000e+00> : vector<1x8x8xf32>
    %24 = tpu.matmul %19, %21, %cst_19 {dimension_numbers = #tpu.dot_dimension_numbers<[2], [2], [1], [1], [0, 0, 0, 1, 1, 1], [0], [0]>} : vector<1x8x16xf32>, vector<1x8x16xf32>, vector<1x8x8xf32> -> vector<1x8x8xf32>
    "tpu.trace_stop"() : () -> ()
    %cst_20 = arith.constant 2.500000e-01 : f32
    %25 = vector.broadcast %cst_20 : f32 to vector<1x8x8xf32>
    %26 = arith.mulf %24, %25 : vector<1x8x8xf32>
    %cst_21 = arith.constant dense<0xFF800000> : vector<1x8xf32>
    %27 = vector.multi_reduction <maximumf>, %26, %cst_21 [2] : vector<1x8x8xf32> to vector<1x8xf32>
    %28 = vector.shape_cast %27 : vector<1x8xf32> to vector<1x8x1xf32>
    %29 = vector.broadcast %28 : vector<1x8x1xf32> to vector<1x8x8xf32>
    %30 = arith.subf %26, %29 : vector<1x8x8xf32>
    %31 = math.exp %30 : vector<1x8x8xf32>
    %cst_22 = arith.constant dense<0.000000e+00> : vector<1x8xf32>
    %32 = vector.multi_reduction <add>, %31, %cst_22 [2] : vector<1x8x8xf32> to vector<1x8xf32>
    %33 = vector.shape_cast %32 : vector<1x8xf32> to vector<1x8x1xf32>
    %34 = vector.broadcast %33 : vector<1x8x1xf32> to vector<1x8x8xf32>
    %35 = arith.divf %31, %34 : vector<1x8x8xf32>
    %36 = vector.broadcast %28 : vector<1x8x1xf32> to vector<1x8x8xf32>
    %37 = arith.subf %26, %36 : vector<1x8x8xf32>
    %38 = math.log %33 : vector<1x8x1xf32>
    %39 = vector.broadcast %38 : vector<1x8x1xf32> to vector<1x8x8xf32>
    %40 = arith.subf %37, %39 : vector<1x8x8xf32>
    %c0_23 = arith.constant 0 : index
    %c0_24 = arith.constant 0 : index
    %c0_25 = arith.constant 0 : index
    %41 = vector.load %arg15[%c0_23, %c0_24, %c0_25] : memref<1x8x16xf32, #tpu.memory_space<vmem>>, vector<1x8x8xf32>
    tpu.vector_store %arg15[%c0_23, %c0_24, %c0_25], %35 {strides = array<i32>} : memref<1x8x16xf32, #tpu.memory_space<vmem>>, vector<1x8x8xf32>,
    %c0_26 = arith.constant 0 : index
    %c0_27 = arith.constant 0 : index
    %c0_28 = arith.constant 0 : index
    %42 = vector.load %arg16[%c0_26, %c0_27, %c0_28] : memref<1x8x16xf32, #tpu.memory_space<vmem>>, vector<1x8x8xf32>
    tpu.vector_store %arg16[%c0_26, %c0_27, %c0_28], %40 {strides = array<i32>} : memref<1x8x16xf32, #tpu.memory_space<vmem>>, vector<1x8x8xf32>,
    "tpu.trace_start"() <{level = 10 : i32, message = "bqk,bkd->bqd"}> : () -> ()
    %cst_29 = arith.constant dense<0.000000e+00> : vector<1x8x16xf32>
    %43 = tpu.matmul %35, %23, %cst_29 {dimension_numbers = #tpu.dot_dimension_numbers<[2], [1], [1], [2], [0, 0, 0, 1, 1, 2], [0], [0]>} : vector<1x8x8xf32>, vector<1x8x16xf32>, vector<1x8x16xf32> -> vector<1x8x16xf32>
    "tpu.trace_stop"() : () -> ()
    %44 = vector.shape_cast %43 : vector<1x8x16xf32> to vector<8x16xf32>
    %c0_30 = arith.constant 0 : index
    %c0_31 = arith.constant 0 : index
    %45 = vector.load %arg17[%c0_30, %c0_31] : memref<8x32xf32, #tpu.memory_space<vmem>>, vector<8x16xf32>
    tpu.vector_store %arg17[%c0_30, %c0_31], %44 {strides = array<i32>} : memref<8x32xf32, #tpu.memory_space<vmem>>, vector<8x16xf32>,
    %46 = vector.extract_strided_slice %7 {offsets = [0, 16], sizes = [8, 16], strides = [1, 1]} : vector<8x32xf32> to vector<8x16xf32>
    %47 = vector.shape_cast %46 : vector<8x16xf32> to vector<1x8x16xf32>
    %48 = vector.extract_strided_slice %12 {offsets = [0, 16], sizes = [8, 16], strides = [1, 1]} : vector<8x32xf32> to vector<8x16xf32>
    %49 = vector.shape_cast %48 : vector<8x16xf32> to vector<1x8x16xf32>
    %50 = vector.extract_strided_slice %17 {offsets = [0, 16], sizes = [8, 16], strides = [1, 1]} : vector<8x32xf32> to vector<8x16xf32>
    %51 = vector.shape_cast %50 : vector<8x16xf32> to vector<1x8x16xf32>
    "tpu.trace_start"() <{level = 10 : i32, message = "bqd,bkd->bqk"}> : () -> ()
    %cst_32 = arith.constant dense<0.000000e+00> : vector<1x8x8xf32>
    %52 = tpu.matmul %47, %49, %cst_32 {dimension_numbers = #tpu.dot_dimension_numbers<[2], [2], [1], [1], [0, 0, 0, 1, 1, 1], [0], [0]>} : vector<1x8x16xf32>, vector<1x8x16xf32>, vector<1x8x8xf32> -> vector<1x8x8xf32>
    "tpu.trace_stop"() : () -> ()
    %cst_33 = arith.constant 2.500000e-01 : f32
    %53 = vector.broadcast %cst_33 : f32 to vector<1x8x8xf32>
    %54 = arith.mulf %52, %53 : vector<1x8x8xf32>
    %cst_34 = arith.constant dense<0xFF800000> : vector<1x8xf32>
    %55 = vector.multi_reduction <maximumf>, %54, %cst_34 [2] : vector<1x8x8xf32> to vector<1x8xf32>
    %56 = vector.shape_cast %55 : vector<1x8xf32> to vector<1x8x1xf32>
    %57 = vector.broadcast %56 : vector<1x8x1xf32> to vector<1x8x8xf32>
    %58 = arith.subf %54, %57 : vector<1x8x8xf32>
    %59 = math.exp %58 : vector<1x8x8xf32>
    %cst_35 = arith.constant dense<0.000000e+00> : vector<1x8xf32>
    %60 = vector.multi_reduction <add>, %59, %cst_35 [2] : vector<1x8x8xf32> to vector<1x8xf32>
    %61 = vector.shape_cast %60 : vector<1x8xf32> to vector<1x8x1xf32>
    %62 = vector.broadcast %61 : vector<1x8x1xf32> to vector<1x8x8xf32>
    %63 = arith.divf %59, %62 : vector<1x8x8xf32>
    %64 = vector.broadcast %56 : vector<1x8x1xf32> to vector<1x8x8xf32>
    %65 = arith.subf %54, %64 : vector<1x8x8xf32>
    %66 = math.log %61 : vector<1x8x1xf32>
    %67 = vector.broadcast %66 : vector<1x8x1xf32> to vector<1x8x8xf32>
    %68 = arith.subf %65, %67 : vector<1x8x8xf32>
    %c0_36 = arith.constant 0 : index
    %c0_37 = arith.constant 0 : index
    %c8 = arith.constant 8 : index
    %69 = vector.load %arg15[%c0_36, %c0_37, %c8] : memref<1x8x16xf32, #tpu.memory_space<vmem>>, vector<1x8x8xf32>
    tpu.vector_store %arg15[%c0_36, %c0_37, %c8], %63 {strides = array<i32>} : memref<1x8x16xf32, #tpu.memory_space<vmem>>, vector<1x8x8xf32>,
    %c0_38 = arith.constant 0 : index
    %c0_39 = arith.constant 0 : index
    %c8_40 = arith.constant 8 : index
    %70 = vector.load %arg16[%c0_38, %c0_39, %c8_40] : memref<1x8x16xf32, #tpu.memory_space<vmem>>, vector<1x8x8xf32>
    tpu.vector_store %arg16[%c0_38, %c0_39, %c8_40], %68 {strides = array<i32>} : memref<1x8x16xf32, #tpu.memory_space<vmem>>, vector<1x8x8xf32>,
    "tpu.trace_start"() <{level = 10 : i32, message = "bqk,bkd->bqd"}> : () -> ()
    %cst_41 = arith.constant dense<0.000000e+00> : vector<1x8x16xf32>
    %71 = tpu.matmul %63, %51, %cst_41 {dimension_numbers = #tpu.dot_dimension_numbers<[2], [1], [1], [2], [0, 0, 0, 1, 1, 2], [0], [0]>} : vector<1x8x8xf32>, vector<1x8x16xf32>, vector<1x8x16xf32> -> vector<1x8x16xf32>
    "tpu.trace_stop"() : () -> ()
    %72 = vector.shape_cast %71 : vector<1x8x16xf32> to vector<8x16xf32>
    %c0_42 = arith.constant 0 : index
    %c16 = arith.constant 16 : index
    %73 = vector.load %arg17[%c0_42, %c16] : memref<8x32xf32, #tpu.memory_space<vmem>>, vector<8x16xf32>
    tpu.vector_store %arg17[%c0_42, %c16], %72 {strides = array<i32>} : memref<8x32xf32, #tpu.memory_space<vmem>>, vector<8x16xf32>,
    %c0_43 = arith.constant 0 : index
    %c0_44 = arith.constant 0 : index
    %74 = vector.load %arg1[%c0_43, %c0_44] : memref<8x32xf32, #tpu.memory_space<vmem>>, vector<8x32xf32>
    %c0_45 = arith.constant 0 : index
    %c0_46 = arith.constant 0 : index
    %75 = vector.load %arg17[%c0_45, %c0_46] : memref<8x32xf32, #tpu.memory_space<vmem>>, vector<8x32xf32>
    %c0_47 = arith.constant 0 : index
    %c0_48 = arith.constant 0 : index
    %76 = vector.load %arg10[%c0_47, %c0_48] : memref<32x32xf32, #tpu.memory_space<vmem>>, vector<32x32xf32>
    %cst_49 = arith.constant dense<0.000000e+00> : vector<8x32xf32>
    %77 = tpu.matmul %75, %76, %cst_49 {dimension_numbers = #tpu.dot_dimension_numbers<[1], [0], [0], [1], [0, 0, 1, 1], [], []>} : vector<8x32xf32>, vector<32x32xf32>, vector<8x32xf32> -> vector<8x32xf32>
    %c0_50 = arith.constant 0 : index
    %c0_51 = arith.constant 0 : index
    %78 = vector.load %arg11[%c0_50, %c0_51] : memref<1x32xf32, #tpu.memory_space<vmem>>, vector<1x32xf32>
    %79 = vector.broadcast %78 : vector<1x32xf32> to vector<8x32xf32>
    %80 = arith.addf %77, %79 : vector<8x32xf32>
    %81 = arith.addf %80, %74 : vector<8x32xf32>
    %cst_52 = arith.constant dense<0.000000e+00> : vector<8xf32>
    %82 = vector.multi_reduction <add>, %81, %cst_52 [1] : vector<8x32xf32> to vector<8xf32>
    %83 = vector.shape_cast %82 : vector<8xf32> to vector<8x1xf32>
    %cst_53 = arith.constant 3.200000e+01 : f32
    %84 = vector.broadcast %cst_53 : f32 to vector<8x1xf32>
    %85 = arith.divf %83, %84 : vector<8x1xf32>
    %86 = vector.broadcast %85 : vector<8x1xf32> to vector<8x32xf32>
    %87 = arith.subf %81, %86 : vector<8x32xf32>
    %88 = arith.mulf %87, %87 : vector<8x32xf32>
    %cst_54 = arith.constant dense<0.000000e+00> : vector<8xf32>
    %89 = vector.multi_reduction <add>, %88, %cst_54 [1] : vector<8x32xf32> to vector<8xf32>
    %90 = vector.shape_cast %89 : vector<8xf32> to vector<8x1xf32>
    %cst_55 = arith.constant 3.200000e+01 : f32
    %91 = vector.broadcast %cst_55 : f32 to vector<8x1xf32>
    %92 = arith.divf %90, %91 : vector<8x1xf32>
    %93 = vector.broadcast %85 : vector<8x1xf32> to vector<8x32xf32>
    %94 = arith.subf %81, %93 : vector<8x32xf32>
    %cst_56 = arith.constant 9.99999974E-6 : f32
    %95 = vector.broadcast %cst_56 : f32 to vector<8x1xf32>
    %96 = arith.addf %92, %95 : vector<8x1xf32>
    %97 = math.rsqrt %96 : vector<8x1xf32>
    %98 = vector.broadcast %97 : vector<8x1xf32> to vector<8x32xf32>
    %99 = arith.mulf %94, %98 : vector<8x32xf32>
    %c0_57 = arith.constant 0 : index
    %c0_58 = arith.constant 0 : index
    %100 = vector.load %arg12[%c0_57, %c0_58] : memref<1x32xf32, #tpu.memory_space<vmem>>, vector<1x32xf32>
    %101 = vector.broadcast %100 : vector<1x32xf32> to vector<8x32xf32>
    %102 = arith.mulf %99, %101 : vector<8x32xf32>
    %c0_59 = arith.constant 0 : index
    %c0_60 = arith.constant 0 : index
    %103 = vector.load %arg13[%c0_59, %c0_60] : memref<1x32xf32, #tpu.memory_space<vmem>>, vector<1x32xf32>
    %104 = vector.broadcast %103 : vector<1x32xf32> to vector<8x32xf32>
    %105 = arith.addf %102, %104 : vector<8x32xf32>
    %c0_61 = arith.constant 0 : index
    %c0_62 = arith.constant 0 : index
    %106 = vector.load %arg14[%c0_61, %c0_62] : memref<8x32xf32, #tpu.memory_space<vmem>>, vector<8x32xf32>
    tpu.vector_store %arg14[%c0_61, %c0_62], %105 {strides = array<i32>} : memref<8x32xf32, #tpu.memory_space<vmem>>, vector<8x32xf32>,
    return
  }
  func.func @transform_0(%arg0: i32) -> (i32, i32) {
    %c0_i32 = arith.constant 0 : i32
    %c0_i32_0 = arith.constant 0 : i32
    return %arg0, %c0_i32 : i32, i32
  }
  func.func @transform_1(%arg0: i32) -> (i32, i32) {
    %c0_i32 = arith.constant 0 : i32
    %c0_i32_0 = arith.constant 0 : i32
    return %arg0, %c0_i32 : i32, i32
  }
  func.func @transform_2(%arg0: i32) -> (i32, i32) {
    %c0_i32 = arith.constant 0 : i32
    %c0_i32_0 = arith.constant 0 : i32
    return %arg0, %c0_i32 : i32, i32
  }
  func.func @transform_3(%arg0: i32) -> (i32, i32) {
    %c0_i32 = arith.constant 0 : i32
    %c0_i32_0 = arith.constant 0 : i32
    %c0_i32_1 = arith.constant 0 : i32
    return %c0_i32, %c0_i32_0 : i32, i32
  }
  func.func @transform_4(%arg0: i32) -> (i32, i32) {
    %c0_i32 = arith.constant 0 : i32
    %c0_i32_0 = arith.constant 0 : i32
    %c0_i32_1 = arith.constant 0 : i32
    return %c0_i32, %c0_i32_0 : i32, i32
  }
  func.func @transform_5(%arg0: i32) -> (i32, i32) {
    %c0_i32 = arith.constant 0 : i32
    %c0_i32_0 = arith.constant 0 : i32
    %c0_i32_1 = arith.constant 0 : i32
    return %c0_i32, %c0_i32_0 : i32, i32
  }
  func.func @transform_6(%arg0: i32) -> (i32, i32) {
    %c0_i32 = arith.constant 0 : i32
    %c0_i32_0 = arith.constant 0 : i32
    %c0_i32_1 = arith.constant 0 : i32
    return %c0_i32, %c0_i32_0 : i32, i32
  }
  func.func @transform_7(%arg0: i32) -> (i32, i32) {
    %c0_i32 = arith.constant 0 : i32
    %c0_i32_0 = arith.constant 0 : i32
    %c0_i32_1 = arith.constant 0 : i32
    return %c0_i32, %c0_i32_0 : i32, i32
  }
  func.func @transform_8(%arg0: i32) -> (i32, i32) {
    %c0_i32 = arith.constant 0 : i32
    %c0_i32_0 = arith.constant 0 : i32
    %c0_i32_1 = arith.constant 0 : i32
    return %c0_i32, %c0_i32_0 : i32, i32
  }
  func.func @transform_9(%arg0: i32) -> (i32, i32) {
    %c0_i32 = arith.constant 0 : i32
    %c0_i32_0 = arith.constant 0 : i32
    %c0_i32_1 = arith.constant 0 : i32
    return %c0_i32, %c0_i32_0 : i32, i32
  }
  func.func @transform_10(%arg0: i32) -> (i32, i32) {
    %c0_i32 = arith.constant 0 : i32
    %c0_i32_0 = arith.constant 0 : i32
    %c0_i32_1 = arith.constant 0 : i32
    return %c0_i32, %c0_i32_0 : i32, i32
  }
  func.func @transform_11(%arg0: i32) -> (i32, i32) {
    %c0_i32 = arith.constant 0 : i32
    %c0_i32_0 = arith.constant 0 : i32
    %c0_i32_1 = arith.constant 0 : i32
    return %c0_i32, %c0_i32_0 : i32, i32
  }
  func.func @transform_12(%arg0: i32) -> (i32, i32) {
    %c0_i32 = arith.constant 0 : i32
    %c0_i32_0 = arith.constant 0 : i32
    %c0_i32_1 = arith.constant 0 : i32
    return %c0_i32, %c0_i32_0 : i32, i32
  }
  func.func @transform_13(%arg0: i32) -> (i32, i32) {
    %c0_i32 = arith.constant 0 : i32
    %c0_i32_0 = arith.constant 0 : i32
    return %arg0, %c0_i32 : i32, i32
  }
  func.func @transform_14(%arg0: i32) -> (i32, i32, i32) {
    %c0_i32 = arith.constant 0 : i32
    %c0_i32_0 = arith.constant 0 : i32
    %c0_i32_1 = arith.constant 0 : i32
    return %arg0, %c0_i32, %c0_i32_0 : i32, i32, i32
  }
  func.func @transform_15(%arg0: i32) -> (i32, i32, i32) {
    %c0_i32 = arith.constant 0 : i32
    %c0_i32_0 = arith.constant 0 : i32
    %c0_i32_1 = arith.constant 0 : i32
    return %arg0, %c0_i32, %c0_i32_0 : i32, i32, i32
  }
}

</mosaic_0001>

<bundles_post_ra>
// kernel: tpu_custom_call.1
= control target key start
LH: loop header
LB: loop body
LE: loop exit
PB: predicated region body
PF: predicated region fallthrough
CT: control target
= control target key end

     0   :  { %s2771_s0 = inlined_call_operand.hbm [shape: f32[16,32], index: 0, kind: input, shape index: {}]   ;;  %s2772_s1 = inlined_call_operand.hbm [shape: f32[16,32], index: 1, kind: input, shape index: {}]   ;;  %s2773_s2 = inlined_call_operand.hbm [shape: f32[16,32], index: 2, kind: input, shape index: {}]   ;;  %s2774_s3 = inlined_call_operand.hbm [shape: f32[32,32], index: 3, kind: input, shape index: {}]   ;;  %s2775_s4 = inlined_call_operand.hbm [shape: f32[32,32], index: 4, kind: input, shape index: {}]   ;;  %s2776_s5 = inlined_call_operand.hbm [shape: f32[32,32], index: 5, kind: input, shape index: {}]   ;;  %s2777_s6 = inlined_call_operand.vmem [shape: f32[1,32], index: 6, kind: input, shape index: {}]   ;;  %s2778_s7 = inlined_call_operand.vmem [shape: f32[1,32], index: 7, kind: input, shape index: {}]   ;;  %s2779_s8 = inlined_call_operand.vmem [shape: f32[1,32], index: 8, kind: input, shape index: {}]   ;;  %s2780_s9 = inlined_call_operand.hbm [shape: f32[32,32], index: 9, kind: input, shape index: {}]   ;;  %s2781_s10 = inlined_call_operand.vmem [shape: f32[1,32], index: 10, kind: input, shape index: {}]   ;;  %s2782_s11 = inlined_call_operand.vmem [shape: f32[1,32], index: 11, kind: input, shape index: {}]   ;;  %s2783_s12 = inlined_call_operand.vmem [shape: f32[1,32], index: 12, kind: input, shape index: {}]   ;;  %s2784_s13 = inlined_call_operand.hbm [shape: f32[16,32], index: 13, kind: output, shape index: {0}]   ;;  %s2785_s14 = inlined_call_operand.hbm [shape: f32[2,8,16], index: 14, kind: output, shape index: {1}]   ;;  %s2786_s15 = inlined_call_operand.hbm [shape: f32[2,8,16], index: 15, kind: output, shape index: {2}]  }
   0x1   :  { %2813 = sst [smem:[#allocation31_spill]] %s2771_s0 }
   0x2   :  { %2814 = sst [smem:[#allocation32_spill]] %s2772_s1 }
   0x3   :  { %2815 = sst [smem:[#allocation33_spill]] %s2774_s3 }
   0x4   :  { %2816 = sst [smem:[#allocation34_spill]] %s2776_s5 }
   0x5   :  { %2817 = sst [smem:[#allocation35_spill]] %s2782_s11 }
   0x6   :  { %2818 = sst [smem:[#allocation36_spill]] %s2783_s12 }
   0x7   :  { %2819 = sst [smem:[#allocation37_spill]] %s2784_s13 }
   0x8   :  { %2820 = sst [smem:[#allocation38_spill]] %s2785_s14 }
   0x9   :  { %2821 = sst [smem:[#allocation39_spill]] %s2786_s15 }
   0xa   :  { %21 = vsyncpa [#allocation4], 0 }
   0xb   :  { %23 = vsyncpa [#allocation4 + $0x1], 0 }
   0xc   :  { %24 = vsyncpa [#allocation7], 0 }
   0xd   :  { %26 = vsyncpa [#allocation7 + $0x1], 0 }
   0xe   :  { %27 = vsyncpa [#allocation10], 0 }
   0xf   :  { %28 = vsyncpa [#allocation13], 0 }
  0x10   :  { %29 = vsyncpa [#allocation5], 0 }
  0x11   :  { %31 = vsyncpa [#allocation5 + $0x1], 0 }
  0x12   :  { %32 = vsyncpa [#allocation17], 0 }
  0x13   :  { %34 = vsyncpa [#allocation17 + $0x1], 0  ;;  %s2335_s18 = smov 0   ;;  %s2337_s19 = smov 0  }
  0x14   :  { %s2339_s20 = smov 0   ;;  %s2341_s21 = smov 0  }
  0x15 LB: > { %2822 = sst [smem:[#allocation25_spill]] %s2224_s18  ;;  %s2238_s22 = smov [#allocation9]   ;;  %s2236_s21 = sphi %s2341_s21, %s2865_s21   ;;  %s2232_s20 = sphi %s2339_s20, %s2869_s20   ;;  %s2228_s19 = sphi %s2337_s19, %s2868_s19   ;;  %s2224_s18 = sphi %s2335_s18, %s2867_s18  }
  0x16   : > { %2823 = sst [smem:[#allocation26_spill]] %s2236_s21  ;;  %s423_s23 = sshll.u32 %s2238_s22, 4  ;;  %s424_s23 = int_to_ptr.vmem [resolvable:$true] %s423_s23 }
  0x17   : > { %s2356_s24 = sadd.s32 4294967295, %s2236_s21   ;;  %p1649_p0 = scmp.ge.s32.totalorder %s2236_s21, 1 }
  0x18   : > { %p2805_p1 = scmp.eq.s32.totalorder %s2356_s24, 0  ;;  %p411_p2 = scmp.lt.s32.totalorder %s2236_s21, 3 }
  0x19   : > { %s2239_s26 = smov [#allocation12]   ;;  %s1927_s29 = scalar_lea.vmem %s424_s23, 512 }
  0x1a   : > { %p2361_p3 = pnand %p1649_p0, %p411_p2  ;;  %s449_s27 = sshll.u32 %s2239_s26, 4  ;;  %s450_s27 = int_to_ptr.vmem [resolvable:$true] %s449_s27 }
  0x1b   : > { %p1928_p8 = scmp.ne.s32.totalorder %s424_s23, %s1927_s29  ;;  %p1935_p11 = scmp.lt.s32.totalorder %s424_s23, %s424_s23 }
  0x1c   : > { %s2824_s25 = scalar_select %p2361_p3, 1, 0 }
  0x1d   : > { %p1816_p5 = pneg %p2361_p3  ;;  %p1936_p12 = scmp.lt.s32.totalorder %s1927_s29, %s1927_s29 }
  0x1f   : > { %p2370_p6 = pnand %p1816_p5, %p2805_p1  ;;  %p1937_p13 = por %p1936_p12, %p1935_p11 }
  0x21   : > { %s2825_s28 = scalar_select %p2370_p6, 1, 0 }
  0x22   : > { %p2790_p7 = pneg %p2370_p6 }
  0x24   : > { %p1930_p9 = pnand %p1928_p8, %p2790_p7 }
  0x26   : > { %p1931_p10 = pneg %p1930_p9 }
  0x28   : > { %p1938_p0 = pnand %p1937_p13, %p1931_p10 }
  0x2a   : > { %1941 = shalt.err (!%p1938_p0)
}
  0x2b   : > { %s2788_s30 = smov 128   ;;  %s2791_s16 = smov 8  }
  0x2c   : > { %s2826_s3 = sld [smem:[#allocation33_spill]]  ;;  %s1953_s26 = scalar_lea.vmem %s450_s27, 512 }
  0x2d   : > { %p1954_p2 = scmp.ne.s32.totalorder %s450_s27, %s1953_s26  ;;  %p1961_p9 = scmp.lt.s32.totalorder %s450_s27, %s450_s27 }
  0x2e   : > { %p1962_p10 = scmp.lt.s32.totalorder %s1953_s26, %s1953_s26 }
  0x2f   : > { %p1956_p5 = pnand %p1954_p2, %p2790_p7 }
  0x30   : > { %p1963_p11 = por %p1962_p10, %p1961_p9 }
  0x31   : > { %p1957_p8 = pneg %p1956_p5 }
  0x32   : > { %1819 = dma.hbm_to_vmem [thread:$0]  (!%p2370_p6), %s2826_s3, 512, %s424_s23, [#allocation10], %s2788_s30, %s2788_s30, %s2791_s16  }
  0x33   : > { %p1964_p12 = pnand %p1963_p11, %p1957_p8 }
  0x35   : > { %1967 = shalt.err (!%p1964_p12)
}
  0x36   : > { %s2827_s5 = sld [smem:[#allocation34_spill]]  ;;  %s2793_s23 = sadd.s32 4294967294, %s2236_s21  }
  0x37   : > { %s2400_s17 = sadd.s32 1, %s2236_s21   ;;  %s47_s22 = sadd.s32 1, %s2232_s20 }
  0x38   : > { %2828 = sst [smem:[#allocation27_spill]] %s2400_s17  ;;  %s44_s13 = ssub.s32 %s2236_s21, %s2400_s17 }
  0x39   : > { %p45_p13 = scmp.eq.s32.totalorder %s44_s13, 0  ;;  %p54_p0 = scmp.ne.s32.totalorder %s2232_s20, %s2228_s19 }
  0x3a   : > { %p55_p2 = scmp.eq.s32.totalorder %s2236_s21, 0  ;;  %p60_p5 = scmp.ne.s32.totalorder %s2228_s19, %s2224_s18 }
  0x3b   : > { %s2411_s26 = scalar_select %p45_p13, %s2232_s20, %s47_s22  }
  0x3c   : > { %1825 = dma.hbm_to_vmem [thread:$0]  (!%p2370_p6), %s2827_s5, 512, %s450_s27, [#allocation13], %s2788_s30, %s2788_s30, %s2791_s16  }
  0x3d   : > { %2829 = sst [smem:[#allocation28_spill]] %s2411_s26  ;;  %p56_p8 = por %p55_p2, %p54_p0 }
  0x3e   : > { %p2415_p9 = por %p2805_p1, %p60_p5  ;;  %p346_p10 = scmp.eq.s32.totalorder %s2356_s24, 1 }
  0x3f   : > { %p352_p11 = scmp.eq.s32.totalorder %s2793_s23, 1  ;;  %p1853_p12 = scmp.lt.s32.totalorder %s2236_s21, 2 }
  0x40   : > { %s2830_s29 = scalar_select %p2415_p9, 1, 0 }
  0x41   : > { %s2796_s27 = sand.u32 1, %s2232_s20   ;;  %p2424_p4 = por %p346_p10, %p54_p0 }
  0x42   : > { %p2428_p7 = por %p352_p11, %p60_p5  ;;  %s2434_s22 = sshll.u32 %s2796_s27, 3 }
  0x43   : > { %s2831_s30 = scalar_select %p2424_p4, 1, 0 }
  0x44   : > { %s2833_s13 = scalar_select %p2428_p7, 1, 0 }
  0x45   : > { %2832 = sst [smem:[#allocation29_spill]] %s2831_s30  ;;  %s2437_s16 = sshll.u32 %s2236_s21, 7 }
  0x46   : > { %2834 = sst [smem:[#allocation30_spill]] %s2833_s13  ;;  %p2439_p13 = pnand %p1853_p12, %p56_p8 }
  0x47   : > { %s512_s23 = sand.u32 1, %s2236_s21   ;;  %s2836_s1 = sld [smem:[#allocation32_spill]] }
  0x48   : > { %s516_s27 = scalar_lea.vmem [#allocation6], %s2434_s22  ;;  %s2242_s18 = smov [#allocation11]  }
  0x49   : > { %s523_s13 = sshll.u32 %s516_s27, 4  ;;  %s436_s12 = sshll.u32 %s2242_s18, 4  ;;  %s2451_s13 = int_to_ptr.vmem [resolvable:$true] %s523_s13  ;;  %s437_s12 = int_to_ptr.vmem [resolvable:$true] %s436_s12 }
  0x4a   : > { %s2453_s11 = scalar_lea.sflag [#allocation7], %s512_s23  ;;  %p2459_p2 = pneg %p2439_p13 }
  0x4c   : > { %s2837_s21 = scalar_select %p2459_p2, 1, 0 }
  0x4d   : > { %s2448_s17 = scalar_lea.hbm %s2836_s1, %s2437_s16  ;;  %s1973_s27 = scalar_lea.hbm %s2836_s1, 256 }
  0x4e   : > { %s1968_s15 = scalar_lea.hbm %s2448_s17, 128  ;;  %p1974_p10 = scmp.lt.s32.totalorder %s2448_s17, %s2836_s1 }
  0x4f   : > { %p1969_p0 = scmp.ne.s32.totalorder %s2448_s17, %s1968_s15  ;;  %p1975_p11 = scmp.lt.s32.totalorder %s1973_s27, %s1968_s15 }
  0x51   : > { %p1971_p5 = pnand %p2459_p2, %p1969_p0  ;;  %p1976_p12 = por %p1975_p11, %p1974_p10 }
  0x53   : > { %p1972_p8 = pneg %p1971_p5 }
  0x55   : > { %p1977_p1 = pnand %p1976_p12, %p1972_p8 }
  0x57   : > { %1980 = shalt.err (!%p1977_p1)
}
  0x58   : > { %s1981_s18 = scalar_lea.vmem %s2451_s13, 128  ;;  %s2243_s23 = smov [#allocation6]  }
  0x59   : > { %p1982_p7 = scmp.ne.s32.totalorder %s2451_s13, %s1981_s18  ;;  %s1986_s5 = sshll.u32 %s2243_s23, 4  ;;  %s1987_s5 = int_to_ptr.vmem [resolvable:$false] %s1986_s5 }
  0x5a   : > { %s1988_s26 = scalar_lea.vmem %s1987_s5, 256  ;;  %p1989_p4 = scmp.lt.s32.totalorder %s2451_s13, %s1987_s5 }
  0x5b   : > { %p1984_p0 = pnand %p1982_p7, %p2459_p2  ;;  %p1990_p9 = scmp.lt.s32.totalorder %s1988_s26, %s1981_s18 }
  0x5d   : > { %p1985_p5 = pneg %p1984_p0  ;;  %p1991_p3 = por %p1990_p9, %p1989_p4 }
  0x5f   : > { %p1992_p6 = pnand %p1991_p3, %p1985_p5 }
  0x61   : > { %1995 = shalt.err (!%p1992_p6)
}
  0x62   : > { %1835 = dma.hbm_to_vmem [thread:$0]  (!%p2439_p13), %s2448_s17, 128, %s2451_s13, %s2453_s11  }
  0x63   : > { %s2007_s14 = scalar_lea.vmem %s437_s12, 512  ;;  %p2838_p7 = scmp.ne.s32.totalorder %s2825_s28, 0 }
  0x64   : > { %p2008_p1 = scmp.ne.s32.totalorder %s437_s12, %s2007_s14  ;;  %p2015_p12 = scmp.lt.s32.totalorder %s437_s12, %s437_s12 }
  0x65   : > { %p2839_p8 = pneg %p2838_p7  ;;  %p2016_p0 = scmp.lt.s32.totalorder %s2007_s14, %s2007_s14 }
  0x67   : > { %p2010_p10 = pnand %p2008_p1, %p2839_p8  ;;  %p2017_p2 = por %p2016_p0, %p2015_p12 }
  0x69   : > { %p2011_p11 = pneg %p2010_p10 }
  0x6b   : > { %p2018_p4 = pnand %p2017_p2, %p2011_p11 }
  0x6d   : > { %2021 = shalt.err (!%p2018_p4)
}
  0x6e   : > { %s2840_s15 = smov 8   ;;  %s2841_s30 = smov 128  }
  0x6f   : > { %1822 = dma.hbm_to_vmem [thread:$0]  (!%p2838_p7), %s2775_s4, 512, %s437_s12, [#allocation10], %s2841_s30, %s2841_s30, %s2840_s15  }
  0x70   : > { %s2244_s17 = smov [#allocation14]   ;;  %p2842_p6 = pmov %p2839_p8 }
  0x71   : > { %s471_s13 = sshll.u32 %s2244_s17, 4  ;;  %s472_s13 = int_to_ptr.vmem [resolvable:$true] %s471_s13 }
  0x72   : > { %s2033_s23 = scalar_lea.vmem %s472_s13, 512  ;;  %p2041_p5 = scmp.lt.s32.totalorder %s472_s13, %s472_s13 }
  0x73   : > { %p2034_p3 = scmp.ne.s32.totalorder %s472_s13, %s2033_s23  ;;  %p2042_p1 = scmp.lt.s32.totalorder %s2033_s23, %s2033_s23 }
  0x75   : > { %p2036_p9 = pnand %p2034_p3, %p2842_p6  ;;  %p2043_p8 = por %p2042_p1, %p2041_p5 }
  0x77   : > { %p2037_p2 = pneg %p2036_p9 }
  0x79   : > { %p2044_p10 = pnand %p2043_p8, %p2037_p2 }
  0x7b   : > { %2047 = shalt.err (!%p2044_p10)
}
  0x7c   : > { %1828 = dma.hbm_to_vmem [thread:$0]  (!%p2838_p7), %s2780_s9, 512, %s472_s13, [#allocation13], %s2841_s30, %s2841_s30, %s2840_s15  }
  0x7d   : > { %s2843_s0 = sld [smem:[#allocation31_spill]]  ;;  %s498_s28 = scalar_lea.vmem [#allocation3], %s2434_s22 }
  0x7e   : > { %s505_s18 = sshll.u32 %s498_s28, 4  ;;  %s2844_s17 = sand.u32 1, %s2232_s20   ;;  %s506_s18 = int_to_ptr.vmem [resolvable:$true] %s505_s18 }
  0x7f   : > { %s495_s23 = scalar_lea.sflag [#allocation4], %s2844_s17  ;;  %p2845_p12 = scmp.ne.s32.totalorder %s2837_s21, 0 }
  0x83   : > { %s2508_s27 = scalar_lea.hbm %s2843_s0, %s2437_s16  ;;  %s2053_s30 = scalar_lea.hbm %s2843_s0, 256 }
  0x84   : > { %s2048_s1 = scalar_lea.hbm %s2508_s27, 128  ;;  %p2054_p7 = scmp.lt.s32.totalorder %s2508_s27, %s2843_s0 }
  0x85   : > { %p2049_p11 = scmp.ne.s32.totalorder %s2508_s27, %s2048_s1  ;;  %p2055_p3 = scmp.lt.s32.totalorder %s2053_s30, %s2048_s1 }
  0x87   : > { %p2051_p0 = pnand %p2049_p11, %p2845_p12  ;;  %p2056_p6 = por %p2055_p3, %p2054_p7 }
  0x89   : > { %p2052_p4 = pneg %p2051_p0 }
  0x8b   : > { %p2057_p9 = pnand %p2056_p6, %p2052_p4 }
  0x8d   : > { %2060 = shalt.err (!%p2057_p9)
}
  0x8e   : > { %s2061_s26 = scalar_lea.vmem %s506_s18, 128  ;;  %s2245_s14 = smov [#allocation3]  }
  0x8f   : > { %p2062_p2 = scmp.ne.s32.totalorder %s506_s18, %s2061_s26  ;;  %s2066_s28 = sshll.u32 %s2245_s14, 4  ;;  %s2067_s28 = int_to_ptr.vmem [resolvable:$false] %s2066_s28 }
  0x90   : > { %s2068_s17 = scalar_lea.vmem %s2067_s28, 256  ;;  %p2069_p8 = scmp.lt.s32.totalorder %s506_s18, %s2067_s28 }
  0x91   : > { %p2064_p5 = pnand %p2062_p2, %p2845_p12  ;;  %p2070_p10 = scmp.lt.s32.totalorder %s2068_s17, %s2061_s26 }
  0x93   : > { %p2065_p1 = pneg %p2064_p5  ;;  %p2071_p11 = por %p2070_p10, %p2069_p8 }
  0x95   : > { %p2072_p0 = pnand %p2071_p11, %p2065_p1 }
  0x97   : > { %2075 = shalt.err (!%p2072_p0)
}
  0x98   : > { %1832 = dma.hbm_to_vmem [thread:$0]  (!%p2439_p13), %s2508_s27, 128, %s506_s18, %s495_s23  }
  0x99   : > { %s539_s15 = scalar_lea.hbm %s2773_s2, %s2437_s16  ;;  %s534_s30 = scalar_lea.vmem [#allocation8], %s2434_s22 }
  0x9a   : > { %s541_s13 = sshll.u32 %s534_s30, 4  ;;  %s2076_s5 = scalar_lea.hbm %s539_s15, 128  ;;  %s542_s13 = int_to_ptr.vmem [resolvable:$true] %s541_s13 }
  0x9b   : > { %p2077_p4 = scmp.ne.s32.totalorder %s539_s15, %s2076_s5  ;;  %s2081_s28 = scalar_lea.hbm %s2773_s2, 256 }
  0x9c   : > { %p2082_p6 = scmp.lt.s32.totalorder %s539_s15, %s2773_s2  ;;  %p2083_p9 = scmp.lt.s32.totalorder %s2081_s28, %s2076_s5 }
  0x9d   : > { %p2079_p7 = pnand %p2077_p4, %p2845_p12 }
  0x9e   : > { %p2084_p2 = por %p2083_p9, %p2082_p6 }
  0x9f   : > { %p2080_p3 = pneg %p2079_p7 }
  0xa1   : > { %p2085_p5 = pnand %p2084_p2, %p2080_p3 }
  0xa3   : > { %2088 = shalt.err (!%p2085_p5)
}
  0xa4   : > { %s2089_s16 = scalar_lea.vmem %s542_s13, 128  ;;  %s2246_s22 = smov [#allocation8]  }
  0xa5   : > { %p2090_p1 = scmp.ne.s32.totalorder %s542_s13, %s2089_s16  ;;  %s2094_s27 = sshll.u32 %s2246_s22, 4  ;;  %s2095_s27 = int_to_ptr.vmem [resolvable:$false] %s2094_s27 }
  0xa6   : > { %s2096_s18 = scalar_lea.vmem %s2095_s27, 256  ;;  %p2097_p11 = scmp.lt.s32.totalorder %s542_s13, %s2095_s27 }
  0xa7   : > { %p2092_p8 = pnand %p2090_p1, %p2845_p12  ;;  %p2098_p0 = scmp.lt.s32.totalorder %s2096_s18, %s2089_s16 }
  0xa9   : > { %p2093_p10 = pneg %p2092_p8  ;;  %p2099_p4 = por %p2098_p0, %p2097_p11 }
  0xab   : > { %p2100_p7 = pnand %p2099_p4, %p2093_p10 }
  0xad   : > { %2103 = shalt.err (!%p2100_p7)
}
  0xae   : > { %1838 = dma.hbm_to_vmem [thread:$0]  (!%p2439_p13), %s539_s15, 128, %s542_s13, %s2453_s11  }
  0xaf   : > { %p2846_p3 = scmp.ne.s32.totalorder %s2824_s25, 0 }
  0xb0   : > { %s2550_s0 = sand.u32 (!%p2846_p3), 1, %s2228_s19   ;;  %p2847_p12 = scmp.ne.s32.totalorder (!%p2846_p3), %s2830_s29, 0 }
  0xb1   : > { %550 = sbr.rel (%p2846_p3) target bundleno = 2258 (0x8d2), region = 72  ;;  %s2553_s21 = sshll.u32 (!%p2846_p3), %s2550_s0, 3 }
  0xb2   : > { %s553_s23 = scalar_lea.sflag (!%p2846_p3), [#allocation4], %s2550_s0  ;;  %s556_s1 = scalar_lea.vmem (!%p2846_p3), [#allocation3], %s2553_s21 }
  0xb6   : > { %2199 = dma.done.wait (%p2847_p12), %s553_s23, 128  }
  0xb7   : > { %2201 = vsyncadd (%p2847_p12), %s553_s23, 4294967168  ;;  %s561_s3 = sand.u32 1, %s2356_s24   ;;  %s565_s25 = scalar_lea.vmem [#allocation6], %s2553_s21 }
  0xb8   : > { %s562_s11 = scalar_lea.sflag [#allocation7], %s561_s3 }
  0xb9   : > { %2203 = dma.done.wait (%p2847_p12), %s562_s11, 256  }
  0xba   : > { %2205 = vsyncadd (%p2847_p12), %s562_s11, 4294967040  ;;  %s574_s12 = scalar_lea.vmem [#allocation8], %s2553_s21  ;;  %p2848_p13 = scmp.eq.s32.totalorder %s2356_s24, 0 }
  0xbc   : > { %2207 = dma.done.wait (%p2848_p13), [#allocation10], 1024   ;;  %p2849_p6 = pmov %p2848_p13 }
  0xbe   : > { %2209 = vsyncadd (%p2849_p6), [#allocation10], 4294966272  ;;  %p2850_p9 = pmov %p2849_p6 }
  0xbf   : > { %p2851_p2 = pmov %p2849_p6 }
  0xc0   : > { %2211 = dma.done.wait (%p2850_p9), [#allocation13], 1024  }
  0xc1   : > { %2213 = vsyncadd (%p2851_p2), [#allocation13], 4294966272  ;;  %v2247_v0 = vmov 0.0   ;;  %vm2248_vm0 = vmmov 0   ;;  %v748_v1 = vld [vmem:[#allocation11 + $0x18] sm:$0xff]  ;;  %v747_v3 = vld [vmem:[#allocation11 + $0x10] sm:$0xff] }
  0xc2   : > { %1735 = vmatprep.subr.mxu1 %v2247_v0  ;;  %1724 = vmatprep.subr.mxu0 %v2247_v0  ;;  %v663_v2 = vld [vmem:[#allocation9 + $0x18] sm:$0xff]  ;;  %v662_v4 = vld [vmem:[#allocation9 + $0x10] sm:$0xff]  ;;  %v746_v5 = vld [vmem:[#allocation11 + $0x8] sm:$0xff]  ;;  %vm671_vm1 = vcmask 261120   ;;  %vm913_vm2 = vcmask 130048   ;;  %s2249_s5 = smov 112  }
  0xc3   : > { %1743 = vmatprep.mubr.msk.f32.mxu1 %vm2248_vm0, %v2247_v0  ;;  %1732 = vmatprep.mubr.msk.f32.mxu0 %vm2248_vm0, %v2247_v0  ;;  %v661_v6 = vld [vmem:[#allocation9 + $0x8] sm:$0xff]  ;;  %v745_v7 = vld [vmem:[#allocation11] sm:$0xff]  ;;  %v2592_v10 = vld [vmem:[%s556_s1] sm:$0xff]  ;;  %vm991_vm3 = vcmask 64512   ;;  %s2635_s28 = scalar_lea.vmem [#allocation16], %s2553_s21  ;;  %s2644_s17 = scalar_lea.vmem [#allocation18], %s2553_s21 }
  0xc4   : > { %1736 = vmatpush3.msra.mxu1 %v748_v1  ;;  %1725 = vmatpush3.msra.mxu0 %v663_v2  ;;  %v660_v8 = vld [vmem:[#allocation9] sm:$0xff]  ;;  %v1674_v11 = vld [vmem:[%s2778_s7] ss:$0 sm:$0xff]  ;;  %v832_v19 = vld [vmem:[#allocation12 + $0x18] sm:$0xff]  ;;  %s2250_s16 = smov 8   ;;  %vm1179_vm4 = vcmask 130112  }
  0xc5   : > { %1737 = vmatprep.subr.mxu1 %v2247_v0  ;;  %1726 = vmatprep.subr.mxu0 %v2247_v0  ;;  %v658_v9 = vld [vmem:[%s565_s25] sm:$0xff]  ;;  %v831_v20 = vld [vmem:[#allocation12 + $0x10] sm:$0xff]  ;;  %v1273_v61 = vld [vmem:[#allocation14 + $0x18] sm:$0xff]  ;;  %s2251_s22 = smov 16   ;;  %vm1266_vm5 = vcmask 261248   ;;  %s2852_s23 = sld [smem:[#allocation29_spill]] }
  0xc6   : > { %1738 = vmatpush3.msra.mxu1 %v747_v3  ;;  %1727 = vmatpush3.msra.mxu0 %v662_v4  ;;  %v1672_v12 = vld [vmem:[%s2777_s6] ss:$0 sm:$0xff]  ;;  %v829_v22 = vld [vmem:[#allocation12] sm:$0xff]  ;;  %v659_v23 = vld [vmem:[%s574_s12] sm:$0xff]  ;;  %s2675_s1 = sshll.u32 %s2356_s24, 7  ;;  %s2853_s12 = sld [smem:[#allocation38_spill]] }
  0xc7   : > { %1739 = vmatprep.subr.mxu1 %v2247_v0  ;;  %1728 = vmatprep.subr.mxu0 %v2247_v0  ;;  %v830_v21 = vld [vmem:[#allocation12 + $0x8] sm:$0xff]  ;;  %v1272_v62 = vld [vmem:[#allocation14 + $0x10] sm:$0xff]  ;;  %v1270_v1 = vld [vmem:[#allocation14] sm:$0xff]  ;;  %s1423_s15 = sshll.u32 %s2635_s28, 4  ;;  %s2684_s30 = scalar_lea.sflag [#allocation17], %s561_s3  ;;  %s1424_s15 = int_to_ptr.vmem [resolvable:$true] %s1423_s15 }
  0xc8   : > { %1740 = vmatpush3.msra.mxu1 %v746_v5  ;;  %1729 = vmatpush3.msra.mxu0 %v661_v6  ;;  %v1676_v34 = vld [vmem:[%s2779_s8] ss:$0 sm:$0xff]  ;;  %s2104_s13 = scalar_lea.vmem %s1424_s15, 128 }
  0xc9   : > { %1741 = vmatprep.subr.mxu1 %v2247_v0  ;;  %1730 = vmatprep.subr.mxu0 %v2247_v0  ;;  %v1271_v63 = vld [vmem:[#allocation14 + $0x8] sm:$0xff]  ;;  %p2105_p5 = scmp.ne.s32.totalorder %s1424_s15, %s2104_s13 }
  0xca   : > { %1742 = vmatpush3.msra.mxu1 %v745_v7  ;;  %1731 = vmatpush3.msra.mxu0 %v660_v8  ;;  %v1684_v6 = vld [vmem:[%s2781_s10] ss:$0 sm:$0xff] }
  0xcb   : > { %1744 = vmatmul.mubr.msk.f32.vlgmr.msra.gmra.mxu1 %vm671_vm1, %v658_v9  ;;  %1733 = vmatmul.mubr.msk.f32.vlgmr.msra.gmra.mxu0 %vm671_vm1, %v2592_v10  ;;  %p2854_p1 = scmp.ne.s32.totalorder %s2852_s23, 0 }
  0xcc   : > { %1757 = vmatprep.subr.mxu1 %v2247_v0  ;;  %1759 = vmatprep.mubr.msk.f32.mxu1 %vm2248_vm0, %v2247_v0  ;;  %s1421_s29 = scalar_lea.hbm %s2853_s12, %s2675_s1 }
  0xcd   : > { %1746 = vmatprep.subr.mxu0 %v2247_v0  ;;  %1754 = vmatprep.mubr.msk.f32.mxu0 %vm2248_vm0, %v2247_v0  ;;  %p2106_p8 = pnand %p2105_p5, %p2854_p1 }
  0xce   : > { %1747 = vmatpush3.msra.mxu0 %v832_v19 }
  0xcf   : > { %1748 = vmatprep.subr.mxu0 %v2247_v0  ;;  %p2107_p10 = pneg %p2106_p8 }
  0xd0   : > { %1749 = vmatpush3.msra.mxu0 %v831_v20 }
  0xd1   : > { %1750 = vmatprep.subr.mxu0 %v2247_v0 }
  0xd2   : > { %1751 = vmatpush3.msra.mxu0 %v830_v21 }
  0xd3   : > { %1752 = vmatprep.subr.mxu0 %v2247_v0 }
  0xd4   : > { %1753 = vmatpush3.msra.mxu0 %v829_v22 }
  0xd5   : > { %1755 = vmatmul.mubr.msk.f32.vlgmr.msra.gmra.mxu0 %vm671_vm1, %v659_v23  ;;  %1777 = vmatprep.subr.mxu0 %v2247_v0 }
  0xd6   : > { %1785 = vmatprep.mubr.msk.f32.mxu0 %vm2248_vm0, %v2247_v0  ;;  %1778 = vmatpush3.msra.mxu0 %v1273_v61 }
  0xd7   : > { %1779 = vmatprep.subr.mxu0 %v2247_v0 }
  0xd8   : > { %1780 = vmatpush3.msra.mxu0 %v1272_v62 }
  0xd9   : > { %1781 = vmatprep.subr.mxu0 %v2247_v0 }
  0xda   : > { %1782 = vmatpush3.msra.mxu0 %v1271_v63 }
  0xdb   : > { %1783 = vmatprep.subr.mxu0 %v2247_v0 }
  0xdc   : > { %1784 = vmatpush3.msra.mxu0 %v1270_v1 }
 0x18b   : > { %v825_v13 = vpop.f32.mrf.mxu1  ;;  %v741_v14 = vpop.f32.mrf.mxu0 }
 0x18c   : > { %v826_v15 = vadd.f32 %v1674_v11, %v825_v13  ;;  %v742_v16 = vadd.f32 %v1672_v12, %v741_v14 }
 0x18d   : > { %v1745_v17 = vpop.f32.mrf.mxu1  ;;  %v1734_v18 = vpop.f32.mrf.mxu0 }
 0x18e   : > { %1084 = vrot.lane.b32.xlu1 %v826_v15, %s2249_s5  ;;  %1758 = vmatpush3.xpose.msk.msra.mxu1 %vm913_vm2, %v826_v15 }
 0x18f   : > { %1762 = vmatprep.subr.mxu1 %v2247_v0 }
 0x191   : > { %1760 = vmatmul.mubr.msk.f32.vlgmr.msra.gmra.mxu1 %vm913_vm2, %v742_v16 }
 0x192   : > { %1082 = vrot.lane.b32.xlu1 %v742_v16, %s2249_s5  ;;  %1764 = vmatprep.mubr.msk.f32.mxu1 %vm2248_vm0, %v2247_v0 }
 0x195   : > { %v909_v33 = vpop.f32.mrf.mxu0 }
 0x196   : > { %v910_v35 = vadd.f32 %v1676_v34, %v909_v33 }
 0x197   : > { %v1756_v36 = vpop.f32.mrf.mxu0 }
 0x198   : > { %1763 = vmatpush3.msra.mxu1 %v910_v35 }
 0x199   : > { %1767 = vmatprep.subr.mxu1 %v2247_v0 }
 0x200   : > { %v1085_v39 = vpop.permute.xlu1 %1084 }
 0x204   : > { %v1083_v44 = vpop.permute.xlu1 %1082 }
 0x251   : > { %v986_v24 = vpop.f32.mrf.mxu1 }
 0x252   : > { %v990_v25 = vmul.f32 0.25, %v986_v24 }
 0x253   : > { %v1761_v26 = vpop.f32.mrf.mxu1 }
 0x254   : > { %v992_v27 = vsel %vm991_vm3, %v990_v25, -inf }
 0x255   : > { %993 = vmax.xlane.f32.xlu0 %v992_v27 }
 0x2de   : > { %v994_v28 = vpop.xlane.xlu0 %993 }
 0x2df   : > { %v995_v29 = vsub.f32 %v990_v25, %v994_v28 }
 0x2e1   : > { %v996_v30 = vmul.f32 1.442695, %v995_v29 }
 0x2e3   : > { %1902 = vpow2.f32 %v996_v30 }
 0x2f0   : > { %v1903_v31 = vpop.eup %1902 }
 0x2f1   : > { %v998_v32 = vsel %vm991_vm3, %v1903_v31, 0.0 }
 0x2f2   : > { %999 = vadd.xlane.f32.xlu0 %v998_v32 }
 0x37b   : > { %v1000_v37 = vpop.xlane.xlu0 %999 }
 0x37c   : > { %1904 = vrcp.f32 %v1000_v37 }
 0x37d   : > { %1906 = vlog2.f32 %v1000_v37 }
 0x389   : > { %v1905_v38 = vpop.eup %1904 }
 0x38a   : > { %v1907_v40 = vpop.eup %1906  ;;  %v1002_v41 = vmul.f32 %v1905_v38, %v1903_v31 }
 0x38b   : > { %v1004_v42 = vmul.f32 0.6931472, %v1907_v40 }
 0x38c   : > { %1765 = vmatmul.mubr.msk.f32.vlgmr.msra.gmra.mxu1 %vm991_vm3, %v1002_v41  ;;  %1006 = vst.msk [vmem:[%s2635_s28] sm:$0xff] %vm991_vm3, %v1002_v41 }
 0x38d   : > { %v1005_v43 = vsub.f32 %v995_v29, %v1004_v42  ;;  %1768 = vmatpush3.xpose.msk.msra.mxu1 %vm913_vm2, %v1085_v39  ;;  %1769 = vmatprep.mubr.msk.f32.mxu1 %vm2248_vm0, %v2247_v0 }
 0x38e   : > { %1772 = vmatprep.subr.mxu1 %v2247_v0 }
 0x38f   : > { %1007 = vst.msk [vmem:[%s2644_s17] sm:$0xff] %vm991_vm3, %v1005_v43 }
 0x390   : > { %1770 = vmatmul.mubr.msk.f32.vlgmr.msra.gmra.mxu1 %vm913_vm2, %v1083_v44 }
 0x391   : > { %1774 = vmatprep.mubr.msk.f32.mxu1 %vm2248_vm0, %v2247_v0 }
 0x44c   : > { %v1077_v45 = vpop.f32.mrf.mxu1 }
 0x44d   : > { %1081 = vst.msk [vmem:[#allocation2] sm:$0xff] %vm913_vm2, %v1077_v45 }
 0x44e   : > { %v1766_v46 = vpop.f32.mrf.mxu1 }
 0x450   : > { %v1156_v47 = vpop.f32.mrf.mxu1 }
 0x451   : > { %v1160_v48 = vmul.f32 0.25, %v1156_v47 }
 0x452   : > { %v1771_v49 = vpop.f32.mrf.mxu1 }
 0x453   : > { %v1161_v50 = vsel %vm991_vm3, %v1160_v48, -inf }
 0x454   : > { %1162 = vmax.xlane.f32.xlu0 %v1161_v50 }
 0x46a   : > { %1187 = vrot.lane.b32.xlu0 %v910_v35, %s2249_s5  ;;  %s2252_s5 = smov [#allocation16]  }
 0x46b   : > { %s2108_s26 = sshll.u32 %s2252_s5, 4  ;;  %s2109_s26 = int_to_ptr.vmem [resolvable:$false] %s2108_s26 }
 0x46c   : > { %s2110_s14 = scalar_lea.vmem %s2109_s26, 256  ;;  %p2111_p11 = scmp.lt.s32.totalorder %s1424_s15, %s2109_s26 }
 0x46d   : > { %p2112_p0 = scmp.lt.s32.totalorder %s2110_s14, %s2104_s13 }
 0x46f   : > { %p2113_p4 = por %p2112_p0, %p2111_p11 }
 0x471   : > { %p2114_p7 = pnand %p2113_p4, %p2107_p10 }
 0x4dd   : > { %v1163_v51 = vpop.xlane.xlu0 %1162 }
 0x4de   : > { %v1164_v52 = vsub.f32 %v1160_v48, %v1163_v51 }
 0x4e0   : > { %v1165_v53 = vmul.f32 1.442695, %v1164_v52 }
 0x4e1   : > { %v1188_v54 = vpop.permute.xlu0 %1187 }
 0x4e2   : > { %1908 = vpow2.f32 %v1165_v53  ;;  %1773 = vmatpush3.msra.mxu1 %v1188_v54 }
 0x4ef   : > { %v1909_v55 = vpop.eup %1908 }
 0x4f0   : > { %v1167_v56 = vsel %vm991_vm3, %v1909_v55, 0.0 }
 0x4f1   : > { %1168 = vadd.xlane.f32.xlu1 %v1167_v56 }
 0x57a   : > { %v1169_v57 = vpop.xlane.xlu1 %1168 }
 0x57b   : > { %1910 = vrcp.f32 %v1169_v57 }
 0x57c   : > { %1912 = vlog2.f32 %v1169_v57 }
 0x588   : > { %v1911_v58 = vpop.eup %1910 }
 0x589   : > { %v1171_v59 = vmul.f32 %v1911_v58, %v1909_v55  ;;  %v1913_v17 = vpop.eup %1912 }
 0x58a   : > { %v1173_v18 = vmul.f32 0.6931472, %v1913_v17 }
 0x58b   : > { %1176 = vrot.lane.b32.xlu1 %v1171_v59, %s2250_s16  ;;  %1775 = vmatmul.mubr.msk.f32.vlgmr.msra.gmra.mxu1 %vm991_vm3, %v1171_v59 }
 0x5fd   : > { %v1177_v60 = vpop.permute.xlu1 %1176 }
 0x5fe   : > { %1180 = vst.msk [vmem:[%s2635_s28] sm:$0xff] %vm1179_vm4, %v1177_v60 }
 0x64b   : > { %v1258_v2 = vpop.f32.mrf.mxu1 }
 0x64c   : > { %1263 = vrot.lane.b32.xlu0 %v1258_v2, %s2251_s22 }
 0x64d   : > { %v1776_v3 = vpop.f32.mrf.mxu1 }
 0x6be   : > { %v1264_v4 = vpop.permute.xlu0 %1263 }
 0x6bf   : > { %1267 = vst.msk [vmem:[#allocation2] sm:$0xff] %vm1266_vm5, %v1264_v4 }
 0x6c6   : > { %v1269_v5 = vld [vmem:[#allocation2] sm:$0xff] }
 0x6c7   : > { %1786 = vmatmul.mubr.msk.f32.vlgmr.msra.gmra.mxu0 %vm671_vm1, %v1269_v5 }
 0x787   : > { %v1350_v7 = vpop.f32.mrf.mxu0 }
 0x788   : > { %v1351_v8 = vadd.f32 %v1684_v6, %v1350_v7 }
 0x789   : > { %v1787_v9 = vpop.f32.mrf.mxu0 }
 0x78a   : > { %v1354_v0 = vadd.f32 %v1351_v8, %v2592_v10  ;;  %v1174_v10 = vsub.f32 %v1164_v52, %v1173_v18 }
 0x78c   : > { %v1355_v11 = vsel %vm671_vm1, %v1354_v0, 0.0 }
 0x78d   : > { %1356 = vadd.xlane.f32.xlu0 %v1355_v11 }
 0x816   : > { %v1357_v12 = vpop.xlane.xlu0 %1356 }
 0x817   : > { %v1359_v13 = vmul.f32 0.03125, %v1357_v12 }
 0x819   : > { %v2668_v14 = vsub.f32 %v1354_v0, %v1359_v13 }
 0x81b   : > { %v1361_v15 = vmul.f32 %v2668_v14, %v2668_v14 }
 0x81d   : > { %v1362_v16 = vsel %vm671_vm1, %v1361_v15, 0.0 }
 0x81e   : > { %1363 = vadd.xlane.f32.xlu1 %v1362_v16 }
 0x82f   : > { %1182 = vrot.lane.b32.xlu1 %v1174_v10, %s2250_s16 }
 0x830   : > { %2117 = shalt.err (!%p2114_p7)
}
 0x831   : > { %s2118_s16 = scalar_lea.hbm %s1421_s29, 128  ;;  %s2122_s28 = scalar_lea.hbm %s2853_s12, 256 }
 0x832   : > { %p2119_p3 = scmp.ne.s32.totalorder %s1421_s29, %s2118_s16  ;;  %p2123_p6 = scmp.lt.s32.totalorder %s1421_s29, %s2853_s12 }
 0x833   : > { %p2124_p9 = scmp.lt.s32.totalorder %s2122_s28, %s2118_s16 }
 0x834   : > { %p2120_p12 = pnand %p2119_p3, %p2854_p1 }
 0x835   : > { %p2125_p2 = por %p2124_p9, %p2123_p6 }
 0x836   : > { %p2121_p13 = pneg %p2120_p12 }
 0x838   : > { %p2126_p5 = pnand %p2125_p2, %p2121_p13 }
 0x83a   : > { %2129 = shalt.err (!%p2126_p5)
}
 0x83b   : > { %1811 = dma.vmem_to_hbm [thread:$0]  (%p2854_p1), %s1424_s15, 128, %s1421_s29, %s2684_s30  }
 0x83c   : > { %s1436_s18 = sshll.u32 %s2644_s17, 4  ;;  %s2855_s13 = sld [smem:[#allocation39_spill]]  ;;  %s1437_s18 = int_to_ptr.vmem [resolvable:$true] %s1436_s18 }
 0x83d   : > { %s2130_s26 = scalar_lea.vmem %s1437_s18, 128  ;;  %s2253_s29 = smov [#allocation18]  }
 0x83e   : > { %p2131_p8 = scmp.ne.s32.totalorder %s1437_s18, %s2130_s26  ;;  %s2134_s15 = sshll.u32 %s2253_s29, 4  ;;  %s2135_s15 = int_to_ptr.vmem [resolvable:$false] %s2134_s15 }
 0x83f   : > { %s2136_s14 = scalar_lea.vmem %s2135_s15, 256  ;;  %p2137_p0 = scmp.lt.s32.totalorder %s1437_s18, %s2135_s15 }
 0x840   : > { %p2132_p10 = pnand %p2131_p8, %p2854_p1  ;;  %p2138_p4 = scmp.lt.s32.totalorder %s2136_s14, %s2130_s26 }
 0x842   : > { %s2704_s5 = scalar_lea.hbm %s2855_s13, %s2675_s1  ;;  %p2133_p11 = pneg %p2132_p10 }
 0x843   : > { %p2139_p7 = por %p2138_p4, %p2137_p0 }
 0x845   : > { %p2140_p3 = pnand %p2139_p7, %p2133_p11 }
 0x8a7   : > { %v1364_v19 = vpop.xlane.xlu1 %1363 }
 0x8a8   : > { %v1365_v20 = vmul.f32 0.03125, %v1364_v19 }
 0x8aa   : > { %v1366_v21 = vadd.f32 1e-05, %v1365_v20 }
 0x8ab   : > { %v1183_v22 = vpop.permute.xlu1 %1182 }
 0x8ac   : > { %1914 = vrsqrt.f32 %v1366_v21  ;;  %1185 = vst.msk [vmem:[%s2644_s17] sm:$0xff] %vm1179_vm4, %v1183_v22 }
 0x8ad   : > { %2143 = shalt.err (!%p2140_p3)
}
 0x8ae   : > { %s2144_s16 = scalar_lea.hbm %s2704_s5, 128  ;;  %s2148_s3 = scalar_lea.hbm %s2855_s13, 256 }
 0x8af   : > { %p2145_p12 = scmp.ne.s32.totalorder %s2704_s5, %s2144_s16  ;;  %p2149_p9 = scmp.lt.s32.totalorder %s2704_s5, %s2855_s13 }
 0x8b0   : > { %p2150_p2 = scmp.lt.s32.totalorder %s2148_s3, %s2144_s16 }
 0x8b1   : > { %p2146_p13 = pnand %p2145_p12, %p2854_p1 }
 0x8b2   : > { %p2151_p5 = por %p2150_p2, %p2149_p9 }
 0x8b3   : > { %p2147_p6 = pneg %p2146_p13 }
 0x8b5   : > { %p2152_p8 = pnand %p2151_p5, %p2147_p6 }
 0x8b7   : > { %2155 = shalt.err (!%p2152_p8)
}
 0x8b8   : > { %1812 = dma.vmem_to_hbm [thread:$0]  (%p2854_p1), %s1437_s18, 128, %s2704_s5, %s2684_s30  }
 0x8b9   : > { %v1915_v23 = vpop.eup %1914  ;;  %s2856_s25 = sld [smem:[#allocation35_spill]]  ;;  %s642_s14 = scalar_lea.vmem [#allocation15], %s2553_s21 }
 0x8ba   : > { %v1368_v25 = vmul.f32 %v1915_v23, %v2668_v14  ;;  %s2857_s15 = sld [smem:[#allocation36_spill]]  ;;  %s1410_s16 = sshll.u32 %s642_s14, 4  ;;  %s1411_s16 = int_to_ptr.vmem [resolvable:$true] %s1410_s16 }
 0x8bb   : > { %s2858_s3 = sld [smem:[#allocation37_spill]]  ;;  %s1387_s30 = scalar_lea.sflag [#allocation5], %s2550_s0 }
 0x8bc   : > { %s2156_s18 = scalar_lea.vmem %s1411_s16, 128  ;;  %s2254_s5 = smov [#allocation15]  }
 0x8bd   : > { %p2157_p10 = scmp.ne.s32.totalorder %s1411_s16, %s2156_s18  ;;  %s2160_s22 = sshll.u32 %s2254_s5, 4  ;;  %s2161_s22 = int_to_ptr.vmem [resolvable:$false] %s2160_s22 }
 0x8be   : > { %s2162_s21 = scalar_lea.vmem %s2161_s22, 256  ;;  %p2163_p4 = scmp.lt.s32.totalorder %s1411_s16, %s2161_s22 }
 0x8bf   : > { %v1686_v24 = vld [vmem:[%s2856_s25] ss:$0 sm:$0xff]  ;;  %p2158_p11 = pnand %p2157_p10, %p2854_p1  ;;  %p2164_p7 = scmp.lt.s32.totalorder %s2162_s21, %s2156_s18 }
 0x8c0   : > { %v1687_v26 = vld [vmem:[%s2857_s15] ss:$0 sm:$0xff]  ;;  %v1376_v27 = vmul.f32 %v1686_v24, %v1368_v25 }
 0x8c1   : > { %s1408_s28 = scalar_lea.hbm %s2858_s3, %s2675_s1  ;;  %p2159_p0 = pneg %p2158_p11 }
 0x8c2   : > { %v1384_v28 = vadd.f32 %v1687_v26, %v1376_v27  ;;  %p2165_p3 = por %p2164_p7, %p2163_p4 }
 0x8c4   : > { %1385 = vst.msk [vmem:[%s642_s14] sm:$0xff] %vm671_vm1, %v1384_v28  ;;  %p2166_p12 = pnand %p2165_p3, %p2159_p0 }
 0x8c6   : > { %2169 = shalt.err (!%p2166_p12)
}
 0x8c7   : > { %s2170_s27 = scalar_lea.hbm %s1408_s28, 128  ;;  %s2174_s11 = scalar_lea.hbm %s2858_s3, 256 }
 0x8c8   : > { %p2171_p13 = scmp.ne.s32.totalorder %s1408_s28, %s2170_s27  ;;  %p2175_p2 = scmp.lt.s32.totalorder %s1408_s28, %s2858_s3 }
 0x8c9   : > { %p2176_p5 = scmp.lt.s32.totalorder %s2174_s11, %s2170_s27 }
 0x8ca   : > { %p2172_p6 = pnand %p2171_p13, %p2854_p1 }
 0x8cb   : > { %p2177_p8 = por %p2176_p5, %p2175_p2 }
 0x8cc   : > { %p2173_p9 = pneg %p2172_p6 }
 0x8ce   : > { %p2178_p10 = pnand %p2177_p8, %p2173_p9 }
 0x8d0   : > { %2181 = shalt.err (!%p2178_p10)
}
 0x8d1   : > { %1810 = dma.vmem_to_hbm [thread:$0]  (%p2854_p1), %s1411_s16, 128, %s1408_s28, %s1387_s30  }
 0x8d2 PF: > { %s2859_s29 = sld [smem:[#allocation25_spill]] }
 0x8d3   : > { %s2860_s15 = sld [smem:[#allocation30_spill]] }
 0x8d4   : > { %s2861_s14 = sld [smem:[#allocation26_spill]] }
 0x8d8   : > { %s1448_s17 = sand.u32 1, %s2859_s29  }
 0x8d9   : > { %p2862_p11 = scmp.ne.s32.totalorder %s2860_s15, 0  ;;  %s1449_s24 = scalar_lea.sflag [#allocation5], %s1448_s17 }
 0x8da   : > { %p2863_p0 = scmp.ge.s32.totalorder %s2861_s14, 2 }
 0x8dc   : > { %p1840_p4 = pnand %p2863_p0, %p2862_p11 }
 0x8de   : > { %p1841_p7 = pneg %p1840_p4 }
 0x8e0   : > { %2215 = dma.done.wait (%p1841_p7), %s1449_s24, 128  }
 0x8e1   : > { %2217 = vsyncadd (%p1841_p7), %s1449_s24, 4294967168  ;;  %s2864_s18 = sadd.s32 4294967294, %s2861_s14  }
 0x8e2   : > { %s1457_s5 = sand.u32 1, %s2864_s18  }
 0x8e3   : > { %s1458_s22 = scalar_lea.sflag [#allocation17], %s1457_s5 }
 0x8e4   : > { %2219 = dma.done.wait (%p1841_p7), %s1458_s22, 256  }
 0x8e5   : > { %2221 = vsyncadd (%p1841_p7), %s1458_s22, 4294967040  ;;  %s2865_s21 = sld [smem:[#allocation27_spill]]  ;;  %s2867_s18 = smov %s2228_s19 }
 0x8e6   : > { %s2866_s23 = sld [smem:[#allocation28_spill]]  ;;  %s2868_s19 = smov %s2232_s20 }
 0x8eb   : > { %p37_p1 = scmp.ge.s32.totalorder %s2865_s21, 4  }
 0x8ec   : > { %s2869_s20 = smov %s2866_s23 }
 0x8ed   :  { %39 = sbr.rel (!%p37_p1) target bundleno = 21 (0x15), region = 189 }
 0x8f2   :  { %1472 = vsyncpa [#allocation4], 1 }
 0x8f3   :  { %1474 = vsyncpa [#allocation4 + $0x1], 1 }
 0x8f4   :  { %1475 = vsyncpa [#allocation7], 1 }
 0x8f5   :  { %1477 = vsyncpa [#allocation7 + $0x1], 1 }
 0x8f6   :  { %1478 = vsyncpa [#allocation10], 1 }
 0x8f7   :  { %1479 = vsyncpa [#allocation13], 1 }
 0x8f8   :  { %1480 = vsyncpa [#allocation5], 1 }
 0x8f9   :  { %1482 = vsyncpa [#allocation5 + $0x1], 1 }
 0x8fa   :  { %1483 = vsyncpa [#allocation17], 1 }
 0x8fb   :  { %1485 = vsyncpa [#allocation17 + $0x1], 1 }

</bundles_post_ra>
